<compile_context>
chip_gen: v6e
topology: v6e:2x2x1
jax: 0.10.0
libtpu: 0.0.40
codegen_flags: <defaults>
</compile_context>

<pallas_src>
import functools

import jax
import jax.numpy as jnp
from jax.experimental import pallas as pl
from jax.experimental.pallas import tpu as pltpu


def head_kernel(x_ref, w_ref, o_ref, *, bf16_exp):
    # x_ref: (bb, T, C) bf16   w_ref: (C, 3H) bf16   o_ref: (bb, H, T) f32
    x = x_ref[...]
    w = w_ref[...]
    bb, T, C = x.shape
    H = w.shape[1] // 3

    # --- fused Q/K/V projection: one bf16 MXU matmul, f32 accumulation ---
    if T % 16 == 0:
        # (bb,T,C)->(bb*T,C) is a free tile-stack when T % 16 == 0: one big-M dot.
        qkv = jnp.dot(x.reshape(bb * T, C), w,
                      preferred_element_type=jnp.float32).reshape(bb, T, 3 * H)
    else:
        # Non-tile-aligned T: the reshape above would force a VMEM relayout.
        # bb is a static Python int, so this unrolls to bb small 2-D MXU dots.
        qkv = jnp.stack(
            [jnp.dot(x[i], w, preferred_element_type=jnp.float32)
             for i in range(bb)],
            axis=0)

    # Single f32->bf16 cast, then lane slices (the C**-0.5 scale is already
    # folded into the Q columns of the fused weight in the wrapper).
    qkv = qkv.astype(jnp.bfloat16)
    q = qkv[..., :H]
    k = qkv[..., H:2 * H]
    v = qkv[..., 2 * H:]

    # --- attention scores: contract on the head dim (no explicit k.T) ---
    scores = jnp.einsum('bqd,bkd->bqk', q, k,
                        preferred_element_type=jnp.float32)   # (bb, T, T) f32

    # --- causal mask (tril): keep where row >= col ---
    row = jax.lax.broadcasted_iota(jnp.int32, (T, T), 0)
    col = jax.lax.broadcasted_iota(jnp.int32, (T, T), 1)
    scores = jnp.where(row >= col, scores, -jnp.inf)

    # --- softmax over keys ---
    m = jnp.max(scores, axis=-1, keepdims=True)
    z = scores - m
    if bf16_exp:
        # v6e/v7x: bf16 EUP -> ~2x transcendental throughput for the (T,T) exp.
        p = jnp.exp(z.astype(jnp.bfloat16))
        denom = jnp.sum(p.astype(jnp.float32), axis=-1, keepdims=True)
    else:
        # v5e has no bf16 EUP: keep exp in f32.
        p = jnp.exp(z)
        denom = jnp.sum(p, axis=-1, keepdims=True)
    attn = (p * pl.reciprocal(denom, approx=True)).astype(jnp.bfloat16)

    # TODO(synk): dropout is identity in eval mode; training-mode dropout would
    # use pltpu.prng_seed / pltpu.prng_random_bits on `attn` here.

    # --- weighted sum of values, emitted transposed as (bb, H, T) so the
    #     output store is lane-dense (T on lanes) instead of a narrow masked
    #     H-wide vst.msk. The wrapper undoes the transpose. ---
    out_t = jnp.einsum('bkd,bqk->bdq', v, attn,
                       preferred_element_type=jnp.float32)    # (bb, H, T)
    o_ref[...] = out_t.astype(o_ref.dtype)


def _vmem_capacity_bytes():
    """Physical VMEM per TensorCore, with a conservative fallback (v7x: 64 MiB)."""
    try:
        info = pltpu.get_tpu_info()
        for attr in ("vmem_capacity_bytes", "vmem_bytes", "vmem_size_bytes"):
            val = getattr(info, attr, None)
            if val:
                return int(val)
    except Exception:
        pass
    return 64 << 20


def _eup_supports_bf16():
    """bf16 transcendentals exist on v6e/v7x but not on v2-v5 chips."""
    try:
        kind = jax.devices()[0].device_kind.lower()
    except Exception:
        return False
    return not any(g in kind for g in ("v2", "v3", "v4", "v5"))


def _pick_batch_block(B, T, C, H, budget_bytes, min_steps=4):
    """Largest divisor of B whose per-step VMEM working set fits `budget_bytes`
    while keeping at least `min_steps` grid steps (pipeline overlap; v7x 2 TCs)."""
    # Per-batch-row bytes, counting Pallas double buffering and live temporaries:
    #   x tile (bf16, x2 bufs)                     : 4*T*C
    #   qkv f32 + one bf16 copy                    : 18*T*H
    #   out tile (f32, x2 bufs) + f32 temp         : 12*T*H
    #   scores (f32) + p (f32) + attn (bf16)       : 10*T*T
    per_b = 4 * T * C + 30 * T * H + 10 * T * T
    fixed = 2 * (C * 3 * H * 2)            # double-buffered fused bf16 weight
    min_steps = max(1, min(min_steps, B))
    bb = 1
    for d in range(1, B + 1):
        if B % d or (B // d) < min_steps:
            continue
        if fixed + d * per_b <= budget_bytes:
            bb = d
    # TODO(synk): if even bb=1 exceeds the budget (T far beyond block_size=256,
    # especially on v7x's 64 MiB VMEM), switch to a flash-style KV-tiled
    # online-softmax kernel instead of holding the full (T, T) scores in VMEM.
    return bb


def head_forward(x, wk, wq, wv, *, batch_block=None):
    """x: (B, T, C) f32; wk/wq/wv: (C, H) f32 (== nn.Linear.weight.T).
    Returns (B, T, H) f32, matching Head.forward in eval mode."""
    B, T, C = x.shape
    H = wk.shape[1]

    # Fold the C**-0.5 softmax scale into Wq and fuse the three projections
    # into one (C, 3H) operand: a single weight DMA and a lane-denser MXU
    # matmul per grid step. Cast operands to bf16 once, outside the kernel.
    scale = jnp.float32(C) ** jnp.float32(-0.5)
    wqkv = jnp.concatenate([wq * scale, wk, wv], axis=1).astype(jnp.bfloat16)
    x_bf16 = x.astype(jnp.bfloat16)

    vmem_cap = _vmem_capacity_bytes()
    budget = vmem_cap // 4                          # working-set budget for bb
    vmem_limit = min((vmem_cap * 3) // 4, 112 << 20)

    if batch_block is None:
        bb = _pick_batch_block(B, T, C, H, budget, min_steps=4)
    else:
        bb = int(batch_block)
        if bb <= 0 or B % bb != 0:
            raise ValueError(
                f"batch_block={bb} must be a positive divisor of B={B} "
                "(otherwise trailing batch rows would never be written)")
    grid = (B // bb,)

    kernel = functools.partial(head_kernel, bf16_exp=_eup_supports_bf16())

    # NOTE: at toy shapes (everything inside a single vreg tile) a plain XLA
    # einsum wins; this Pallas path targets T = block_size-scale inputs.
    out_t = pl.pallas_call(
        kernel,
        out_shape=jax.ShapeDtypeStruct((B, H, T), jnp.float32),
        grid_spec=pltpu.PrefetchScalarGridSpec(
            num_scalar_prefetch=0,
            grid=grid,
            in_specs=[
                pl.BlockSpec((bb, T, C), lambda i: (i, 0, 0)),
                pl.BlockSpec((C, 3 * H), lambda i: (0, 0)),
            ],
            out_specs=pl.BlockSpec((bb, H, T), lambda i: (i, 0, 0)),
        ),
        compiler_params=pltpu.CompilerParams(
            dimension_semantics=("parallel",),
            vmem_limit_bytes=int(vmem_limit),
        ),
    )(x_bf16, wqkv)

    # Cheap wrapper-side transpose back to the module's (B, T, H) layout.
    return jnp.swapaxes(out_t, -2, -1)


def head_reference(x, wk, wq, wv):
    """Pure-JAX f32 reference matching the PyTorch forward (eval mode)."""
    B, T, C = x.shape
    k = x @ wk
    q = x @ wq
    v = x @ wv
    scores = (q @ jnp.swapaxes(k, -2, -1)) * (C ** -0.5)
    mask = jnp.tril(jnp.ones((T, T), dtype=bool))
    scores = jnp.where(mask, scores, -jnp.inf)
    w = jax.nn.softmax(scores, axis=-1)
    return w @ v


if __name__ == "__main__":
    # Small shapes consistent with the module's forward: B, T, C=n_embed, H=head_size
    B, T, C, H = 2, 8, 32, 8

    key = jax.random.PRNGKey(0)
    kx, kk, kq, kv = jax.random.split(key, 4)
    x = jax.random.normal(kx, (B, T, C), dtype=jnp.float32)
    # Deterministic "linear layer" weights, stored as (C, H) = W^T of nn.Linear
    wk = jax.random.normal(kk, (C, H), dtype=jnp.float32) * (C ** -0.5)
    wq = jax.random.normal(kq, (C, H), dtype=jnp.float32) * (C ** -0.5)
    wv = jax.random.normal(kv, (C, H), dtype=jnp.float32) * (C ** -0.5)

    out = jax.block_until_ready(head_forward(x, wk, wq, wv))
    ref = head_reference(x, wk, wq, wv)

    assert out.shape == (B, T, H)
    # Tolerance accounts for bf16 MXU compute, bf16 exp (v6e/v7x) and the
    # approximate reciprocal vs the f32 reference.
    assert jnp.allclose(out, ref, atol=5e-2, rtol=5e-2), "mismatch vs reference"

    print("KERNEL_OK")
</pallas_src>

<mosaic_0001>
module attributes {stable_mosaic.version = 11 : i64} {
  func.func @head_kernel(%arg0: i32, %arg1: memref<1x8x32xbf16, #tpu.memory_space<vmem>>, %arg2: memref<32x24xbf16, #tpu.memory_space<vmem>>, %arg3: memref<1x8x8xf32, #tpu.memory_space<vmem>>) attributes {dimension_semantics = [#tpu.dimension_semantics<parallel>], iteration_bounds = array<i64: 2>, scalar_prefetch = 0 : i64, scratch_operands = 0 : i64, tpu.core_type = #tpu.core_type<tc>, window_params = [{transform_indices = @transform_0, window_bounds = array<i64: 1, 8, 32>}, {pipeline_mode = #tpu.pipeline_mode<synchronous>, transform_indices = @transform_1, window_bounds = array<i64: 32, 24>}, {transform_indices = @transform_2, window_bounds = array<i64: 1, 8, 8>}]} {
    %c0 = arith.constant 0 : index
    %c0_0 = arith.constant 0 : index
    %c0_1 = arith.constant 0 : index
    %0 = vector.load %arg1[%c0, %c0_0, %c0_1] : memref<1x8x32xbf16, #tpu.memory_space<vmem>>, vector<1x8x32xbf16>
    %c0_2 = arith.constant 0 : index
    %c0_3 = arith.constant 0 : index
    %1 = vector.load %arg2[%c0_2, %c0_3] : memref<32x24xbf16, #tpu.memory_space<vmem>>, vector<32x24xbf16>
    %2 = vector.shape_cast %0 : vector<1x8x32xbf16> to vector<8x32xbf16>
    %cst = arith.constant dense<0.000000e+00> : vector<8x24xf32>
    %3 = tpu.matmul %2, %1, %cst {dimension_numbers = #tpu.dot_dimension_numbers<[1], [0], [0], [1], [0, 0, 1, 1], [], []>} : vector<8x32xbf16>, vector<32x24xbf16>, vector<8x24xf32> -> vector<8x24xf32>
    %4 = vector.shape_cast %3 : vector<8x24xf32> to vector<1x8x24xf32>
    %5 = arith.truncf %4 : vector<1x8x24xf32> to vector<1x8x24xbf16>
    %6 = vector.extract_strided_slice %5 {offsets = [0, 0, 0], sizes = [1, 8, 8], strides = [1, 1, 1]} : vector<1x8x24xbf16> to vector<1x8x8xbf16>
    %7 = vector.extract_strided_slice %5 {offsets = [0, 0, 8], sizes = [1, 8, 8], strides = [1, 1, 1]} : vector<1x8x24xbf16> to vector<1x8x8xbf16>
    %8 = vector.extract_strided_slice %5 {offsets = [0, 0, 16], sizes = [1, 8, 8], strides = [1, 1, 1]} : vector<1x8x24xbf16> to vector<1x8x8xbf16>
    "tpu.trace_start"() <{level = 10 : i32, message = "bqd,bkd->bqk"}> : () -> ()
    %cst_4 = arith.constant dense<0.000000e+00> : vector<1x8x8xf32>
    %9 = tpu.matmul %6, %7, %cst_4 {dimension_numbers = #tpu.dot_dimension_numbers<[2], [2], [1], [1], [0, 0, 0, 1, 1, 1], [0], [0]>} : vector<1x8x8xbf16>, vector<1x8x8xbf16>, vector<1x8x8xf32> -> vector<1x8x8xf32>
    "tpu.trace_stop"() : () -> ()
    %10 = tpu.iota {dimensions = array<i32: 0>} : vector<8x8xi32>
    %11 = tpu.iota {dimensions = array<i32: 1>} : vector<8x8xi32>
    %12 = arith.cmpi sge, %10, %11 : vector<8x8xi32>
    %cst_5 = arith.constant 0xFF800000 : f32
    %13 = vector.shape_cast %12 : vector<8x8xi1> to vector<1x8x8xi1>
    %14 = vector.broadcast %cst_5 : f32 to vector<1x8x8xf32>
    %15 = arith.select %13, %9, %14 : vector<1x8x8xi1>, vector<1x8x8xf32>
    %cst_6 = arith.constant dense<0xFF800000> : vector<1x8xf32>
    %16 = vector.multi_reduction <maximumf>, %15, %cst_6 [2] : vector<1x8x8xf32> to vector<1x8xf32>
    %17 = vector.shape_cast %16 : vector<1x8xf32> to vector<1x8x1xf32>
    %18 = vector.broadcast %17 : vector<1x8x1xf32> to vector<1x8x8xf32>
    %19 = arith.subf %15, %18 : vector<1x8x8xf32>
    %20 = arith.truncf %19 : vector<1x8x8xf32> to vector<1x8x8xbf16>
    %21 = math.exp %20 : vector<1x8x8xbf16>
    %22 = arith.extf %21 : vector<1x8x8xbf16> to vector<1x8x8xf32>
    %cst_7 = arith.constant dense<0.000000e+00> : vector<1x8xf32>
    %23 = vector.multi_reduction <add>, %22, %cst_7 [2] : vector<1x8x8xf32> to vector<1x8xf32>
    %24 = vector.shape_cast %23 : vector<1x8xf32> to vector<1x8x1xf32>
    %25 = tpu.reciprocal %24 {approx = true} : vector<1x8x1xf32> -> vector<1x8x1xf32>
    %26 = arith.extf %21 : vector<1x8x8xbf16> to vector<1x8x8xf32>
    %27 = vector.broadcast %25 : vector<1x8x1xf32> to vector<1x8x8xf32>
    %28 = arith.mulf %26, %27 : vector<1x8x8xf32>
    %29 = arith.truncf %28 : vector<1x8x8xf32> to vector<1x8x8xbf16>
    "tpu.trace_start"() <{level = 10 : i32, message = "bkd,bqk->bdq"}> : () -> ()
    %cst_8 = arith.constant dense<0.000000e+00> : vector<1x8x8xf32>
    %30 = tpu.matmul %8, %29, %cst_8 {dimension_numbers = #tpu.dot_dimension_numbers<[1], [2], [2], [1], [0, 0, 0, 2, 1, 1], [0], [0]>} : vector<1x8x8xbf16>, vector<1x8x8xbf16>, vector<1x8x8xf32> -> vector<1x8x8xf32>
    "tpu.trace_stop"() : () -> ()
    %c0_9 = arith.constant 0 : index
    %c0_10 = arith.constant 0 : index
    %c0_11 = arith.constant 0 : index
    %31 = vector.load %arg3[%c0_9, %c0_10, %c0_11] : memref<1x8x8xf32, #tpu.memory_space<vmem>>, vector<1x8x8xf32>
    tpu.vector_store %arg3[%c0_9, %c0_10, %c0_11], %30 {strides = array<i32>} : memref<1x8x8xf32, #tpu.memory_space<vmem>>, vector<1x8x8xf32>,
    return
  }
  func.func @transform_0(%arg0: i32) -> (i32, i32, i32) {
    %c0_i32 = arith.constant 0 : i32
    %c0_i32_0 = arith.constant 0 : i32
    %c0_i32_1 = arith.constant 0 : i32
    return %arg0, %c0_i32, %c0_i32_0 : i32, i32, i32
  }
  func.func @transform_1(%arg0: i32) -> (i32, i32) {
    %c0_i32 = arith.constant 0 : i32
    %c0_i32_0 = arith.constant 0 : i32
    %c0_i32_1 = arith.constant 0 : i32
    return %c0_i32, %c0_i32_0 : i32, i32
  }
  func.func @transform_2(%arg0: i32) -> (i32, i32, i32) {
    %c0_i32 = arith.constant 0 : i32
    %c0_i32_0 = arith.constant 0 : i32
    %c0_i32_1 = arith.constant 0 : i32
    return %arg0, %c0_i32, %c0_i32_0 : i32, i32, i32
  }
}

</mosaic_0001>

<bundles_post_ra>
// kernel: tpu_custom_call.1
= control target key start
LH: loop header
LB: loop body
LE: loop exit
PB: predicated region body
PF: predicated region fallthrough
CT: control target
= control target key end

     0   :  { %7 = vsyncpa [#allocation3], 0  ;;  %s698_s0 = inlined_call_operand.vmem [shape: bf16[2,8,32], index: 0, kind: input, shape index: {}]   ;;  %s699_s1 = inlined_call_operand.vmem [shape: bf16[32,24], index: 1, kind: input, shape index: {}]   ;;  %s700_s2 = inlined_call_operand.hbm [shape: f32[2,8,8], index: 2, kind: output, shape index: {}]  }
   0x1   :  { %9 = vsyncpa [#allocation3 + $0x1], 0  ;;  %s586_s9 = smov 0   ;;  %s588_s10 = smov 0  }
   0x2   :  { %s590_s11 = smov 0   ;;  %s592_s12 = smov 0  }
   0x3 LB: > { %s607_s13 = sadd.s32 4294967295, %s564_s12   ;;  %s412_s14 = sadd.s32 4294967294, %s564_s12   ;;  %s564_s12 = sphi %s592_s12, %s706_s12   ;;  %s560_s11 = sphi %s590_s11, %s705_s11   ;;  %s556_s10 = sphi %s588_s10, %s704_s10   ;;  %s552_s9 = sphi %s586_s9, %s703_s9  }
   0x4   : > { %s611_s15 = sadd.s32 1, %s564_s12   ;;  %s69_s16 = sadd.s32 1, %s560_s11 }
   0x5   : > { %s66_s17 = ssub.s32 %s564_s12, %s611_s15  ;;  %p79_p0 = scmp.ne.s32.totalorder %s560_s11, %s556_s10 }
   0x6   : > { %p67_p1 = scmp.eq.s32.totalorder %s66_s17, 0  ;;  %p80_p2 = scmp.eq.s32.totalorder %s607_s13, 1 }
   0x7   : > { %p85_p3 = scmp.ne.s32.totalorder %s556_s10, %s552_s9  ;;  %p86_p4 = scmp.eq.s32.totalorder %s412_s14, 1 }
   0x8   : > { %s622_s18 = scalar_select %p67_p1, %s560_s11, %s69_s16  }
   0x9   : > { %p624_p5 = por %p80_p2, %p79_p0  ;;  %p628_p6 = por %p86_p4, %p85_p3 }
   0xa   : > { %p415_p7 = scmp.ge.s32.totalorder %s564_s12, 1  ;;  %p114_p8 = scmp.lt.s32.totalorder %s564_s12, 3 }
   0xc   : > { %p115_p9 = pnand %p415_p7, %p114_p8 }
   0xd   : > { %p135_p10 = scmp.lt.s32.totalorder (!%p115_p9), %s607_s13, 1  ;;  %s568_s30 = smov (!%p115_p9), 120  }
   0xe   : > { %118 = sbr.rel (%p115_p9) target bundleno = 1153 (0x481), region = 28  ;;  %s569_s3 = smov (!%p115_p9), 112  }
   0xf   : > { %s132_s4 = sand.u32 (!%p115_p9), 1, %s556_s10   ;;  %s424_s6 = sshll.u32 (!%p115_p9), %s607_s13, 7 }
  0x10   : > { %s416_s5 = sshll.u32 (!%p115_p9), %s132_s4, 3  ;;  %s656_s17 = scalar_lea.hbm (!%p115_p9), %s700_s2, %s424_s6 }
  0x11   : > { %s134_s7 = scalar_lea.vmem (!%p115_p9), [#allocation2], %s416_s5  ;;  %s340_s21 = scalar_lea.sflag (!%p115_p9), [#allocation3], %s132_s4 }
  0x12   : > { %s353_s8 = sshll.u32 (!%p115_p9), %s134_s7, 4  ;;  %s658_s8 = int_to_ptr.vmem [resolvable:$true] %s353_s8 }
  0x13   : > { %v498_v0 = vld [vmem:[%s699_s1 + $0x8] sm:$0xff]   ;;  %v566_v1 = vmov 0.0   ;;  %v499_v2 = vld [vmem:[%s699_s1] sm:$0xff]   ;;  %vm567_vm0 = vmmov 0   ;;  %s136_s25 = scalar_select %p135_p10, %s607_s13, 1  ;;  %vm157_vm1 = vcmask 261120   ;;  %v252_v11 = vlaneseq }
  0x14   : > { %434 = vmatprep.subr.bf16.mxu0 %v566_v1  ;;  %442 = vmatprep.subr.bf16.mxu1 %v566_v1  ;;  %vm205_vm2 = vcmask 64512   ;;  %s504_s22 = scalar_lea.vmem %s658_s8, 128  ;;  %s570_s13 = smov [#allocation2]  }
  0x15   : > { %435 = vmatpush3.bf16.msra.mxu0 %v498_v0  ;;  %438 = vmatprep.mubr.msk.bf16.mxu0 %vm567_vm0, %v566_v1  ;;  %s417_s26 = sshll.u32 %s136_s25, 2  ;;  %v253_v12 = vshrl.u32 %v252_v11, 7  ;;  %v255_v13 = vand.u32 127, %v252_v11  ;;  %p505_p11 = scmp.ne.s32.totalorder %s658_s8, %s504_s22 }
  0x16   : > { %436 = vmatprep.subr.bf16.mxu0 %v566_v1  ;;  %444 = vmatprep.mubr.msk.bf16.mxu1 %vm567_vm0, %v566_v1  ;;  %s138_s29 = scalar_lea.vmem %s698_s0, %s417_s26  ;;  %s508_s23 = sshll.u32 %s570_s13, 4  ;;  %s509_s23 = int_to_ptr.vmem [resolvable:$false] %s508_s23 }
  0x17   : > { %v140_v3 = vld [vmem:[%s138_s29] sm:$0xf]  ;;  %vm256_vm3 = vcmp.ge.s32.totalorder %v253_v12, %v255_v13  ;;  %p506_p12 = pnand %p505_p11, %p624_p5  ;;  %s510_s24 = scalar_lea.vmem %s509_s23, 256 }
  0x18   : > { %p511_p0 = scmp.lt.s32.totalorder %s658_s8, %s509_s23  ;;  %p512_p1 = scmp.lt.s32.totalorder %s510_s24, %s504_s22 }
  0x19   : > { %437 = vmatpush3.bf16.msra.mxu0 %v499_v2  ;;  %p507_p13 = pneg %p506_p12 }
  0x1a   : > { %448 = vmatprep.subr.bf16.mxu0 %v566_v1  ;;  %p513_p2 = por %p512_p1, %p511_p0 }
  0x1c   : > { %439 = vmatmul.mubr.msk.bf16.vlgmr.msra.gmra.mxu0 %vm157_vm1, %v140_v3  ;;  %p514_p3 = pnand %p513_p2, %p507_p13 }
  0x1d   : > { %450 = vmatprep.mubr.msk.bf16.mxu0 %vm567_vm0, %v566_v1 }
  0xdc   : > { %v195_v4 = vpop.f32.mrf.mxu0 }
  0xdd   : > { %v201_v5 = vpack.c.bf16 %v195_v4, %v195_v4 }
  0xde   : > { %v440_v6 = vpop.f32.mrf.mxu0 }
  0xdf   : > { %203 = vrot.lane.b32.xlu0 %v201_v5, %s568_s30 }
  0xe0   : > { %v198_v7 = vpop.f32.mrf.mxu0 }
  0xe2   : > { %v441_v8 = vpop.f32.mrf.mxu0 }
 0x151   : > { %v204_v9 = vpop.permute.xlu0 %203 }
 0x152   : > { %v210_v10 = vsel %vm205_vm2, %v204_v9, 0 }
 0x153   : > { %443 = vmatpush3.bf16.xpose.msra.mxu1 %v210_v10 }
 0x15a   : > { %445 = vmatmul.mubr.msk.bf16.vlgmr.msra.gmra.mxu1 %vm205_vm2, %v201_v5 }
 0x21a   : > { %v246_v14 = vpop.f32.mrf.mxu1 }
 0x21b   : > { %v257_v15 = vsel %vm256_vm3, %v246_v14, -inf }
 0x21c   : > { %v446_v16 = vpop.f32.mrf.mxu1  ;;  %v258_v17 = vsel %vm205_vm2, %v257_v15, -inf }
 0x21d   : > { %259 = vmax.xlane.f32.xlu0 %v258_v17 }
 0x21e   : > { %v249_v18 = vpop.f32.mrf.mxu1 }
 0x220   : > { %v447_v19 = vpop.f32.mrf.mxu1 }
 0x2a6   : > { %v260_v20 = vpop.xlane.xlu0 %259 }
 0x2a7   : > { %v261_v21 = vsub.f32 %v257_v15, %v260_v20 }
 0x2a9   : > { %v262_v22 = vpack.c.bf16 %v261_v21, %v261_v21 }
 0x2ab   : > { %v264_v23 = vmul.bf16 1069105081, %v262_v22 }
 0x2ad   : > { %500 = vpow.bf16 %v264_v23 }
 0x2bb   : > { %v501_v24 = vpop.eup %500 }
 0x2bc   : > { %v266_v25 = vunpack.c.l.bf16 %v501_v24 }
 0x2be   : > { %v267_v26 = vsel %vm205_vm2, %v266_v25, 0.0 }
 0x2bf   : > { %268 = vadd.xlane.f32.xlu1 %v267_v26 }
 0x2d0   : > { %273 = vrot.lane.b32.xlu1 %v201_v5, %s569_s3 }
 0x348   : > { %v269_v27 = vpop.xlane.xlu1 %268 }
 0x349   : > { %502 = vrcp.f32 %v269_v27 }
 0x34c   : > { %v274_v28 = vpop.permute.xlu1 %273 }
 0x34d   : > { %276 = vxpose.xlu1.c.b16.start.end [1/1] (short) (narrow) %v274_v28, 16 }
 0x356   : > { %v503_v29 = vpop.eup %502 }
 0x357   : > { %v271_v30 = vmul.f32 %v503_v29, %v266_v25 }
 0x359   : > { %v272_v31 = vpack.c.bf16 %v271_v30, %v271_v30 }
 0x35b   : > { %v296_v32 = vsel %vm205_vm2, %v272_v31, 0 }
 0x35c   : > { %449 = vmatpush3.bf16.xpose.msra.mxu0 %v296_v32 }
 0x3af   : > { %v284_v33 = vpop.trf.xlu1 }
 0x3b0   : > { %451 = vmatmul.mubr.msk.bf16.vlgmr.msra.gmra.mxu0 %vm205_vm2, %v284_v33 }
 0x470   : > { %v332_v34 = vpop.f32.mrf.mxu0 }
 0x471   : > { %338 = vst.msk [vmem:[%s134_s7] sm:$0xff] %vm205_vm2, %v332_v34 }
 0x472   : > { %v452_v35 = vpop.f32.mrf.mxu0 }
 0x473   : > { %517 = shalt.err (!%p514_p3)
}
 0x474   : > { %s518_s25 = scalar_lea.hbm %s656_s17, 128  ;;  %s522_s28 = scalar_lea.hbm %s700_s2, 256 }
 0x475   : > { %p519_p4 = scmp.ne.s32.totalorder %s656_s17, %s518_s25  ;;  %p523_p9 = scmp.lt.s32.totalorder %s656_s17, %s700_s2 }
 0x476   : > { %p524_p10 = scmp.lt.s32.totalorder %s522_s28, %s518_s25 }
 0x477   : > { %p520_p7 = pnand %p519_p4, %p624_p5 }
 0x478   : > { %p525_p11 = por %p524_p10, %p523_p9 }
 0x479   : > { %p521_p8 = pneg %p520_p7 }
 0x47b   : > { %p526_p12 = pnand %p525_p11, %p521_p8 }
 0x47d   : > { %529 = shalt.err (!%p526_p12)
}
 0x47e   : > { %454 = dma.vmem_to_hbm [thread:$0]  (%p624_p5), %s658_s8, 128, %s656_s17, %s340_s21   ;;  %v335_v36 = vpop.f32.mrf.mxu0 }
 0x480   : > { %v453_v37 = vpop.f32.mrf.mxu0 }
 0x481 PF: > { %p460_p13 = scmp.ge.s32.totalorder %s564_s12, 2  ;;  %s365_s3 = sand.u32 1, %s552_s9  }
 0x482   : > { %s366_s4 = scalar_lea.sflag [#allocation3], %s365_s3 }
 0x483   : > { %p457_p0 = pnand %p460_p13, %p628_p6 }
 0x485   : > { %p458_p1 = pneg %p457_p0 }
 0x487   : > { %547 = dma.done.wait (%p458_p1), %s366_s4, 128  }
 0x488   : > { %549 = vsyncadd (%p458_p1), %s366_s4, 4294967168  ;;  %p12_p5 = scmp.ge.s32.totalorder %s611_s15, 4   ;;  %s703_s9 = smov %s556_s10 }
 0x489   : > { %s704_s10 = smov %s560_s11  ;;  %s705_s11 = smov %s622_s18 }
 0x48a   : > { %s706_s12 = smov %s611_s15  ;;  %14 = sbr.rel (!%p12_p5) target bundleno = 3 (0x3), region = 63 }
 0x48f   :  { %371 = vsyncpa [#allocation3], 1 }
 0x490   :  { %373 = vsyncpa [#allocation3 + $0x1], 1 }

</bundles_post_ra>
